<compile_context>
chip_gen: v7x
topology: tpu7x:2x2x1
jax: 0.10.0
libtpu: 0.0.40
codegen_flags: <defaults>
</compile_context>

<pallas_src>
import jax
import jax.numpy as jnp
import numpy as np
from jax.experimental import pallas as pl
from jax.experimental.pallas import tpu as pltpu


# ----------------------------------------------------------------------------
# Tiling helper
# ----------------------------------------------------------------------------
def _pick_tile_h(H):
    """Largest even row tile that divides H and leaves >= 2 grid steps."""
    for d in (64, 32, 16, 8, 4, 2):
        if H % d == 0 and d <= H // 2:
            return d
    return H


# ----------------------------------------------------------------------------
# Fused DecoderBlock Pallas kernel
#   [nearest 2x upsample of x] -> [concat skip] -> conv3x3+BN+ReLU
#   -> conv3x3+BN+ReLU, all in one pallas_call, row-tiled with halo recompute.
# ----------------------------------------------------------------------------
def _make_block_kernel(H, W, tile_h, cx, cs, c1, c2, do_upsample):
    R1 = tile_h + 4      # conv1 input rows  (2-row halo each side, zero padded)
    R2 = tile_h + 2      # conv1 output rows (1-row halo each side for conv2)
    cin = cx + cs

    def kernel(*refs):
        if cs > 0:
            (x_ref, skip_ref, w1_ref, s1_ref, b1_ref,
             w2_ref, s2_ref, b2_ref, o_ref) = refs
        else:
            (x_ref, w1_ref, s1_ref, b1_ref,
             w2_ref, s2_ref, b2_ref, o_ref) = refs
            skip_ref = None

        t = pl.program_id(1)
        r0 = pl.multiple_of(t * tile_h, tile_h)      # first output row of tile

        # --- conv1 input slab: rows [r0-2, r0+tile_h+2) of the upsampled &
        #     concatenated full-res feature, zero padded 2 rows / 1 col. ---
        if do_upsample:
            # x_ref holds the half-vertical-res input (cols already 2x'd and
            # zero padded by the wrapper); finish the nearest-2x upsample along
            # rows here so the full-res upsampled map never touches HBM.
            xs = x_ref[0, pl.ds(t * (tile_h // 2), tile_h // 2 + 2), :, :]
            x_slab = jnp.repeat(xs, 2, axis=0)                # (R1, W+2, cx)
        else:
            x_slab = x_ref[0, pl.ds(r0, R1), :, :]            # (R1, W+2, cx)

        if skip_ref is not None:
            s_slab = skip_ref[0, pl.ds(r0, R1), :, :]         # (R1, W+2, cs)
            a1 = jnp.concatenate([x_slab, s_slab], axis=-1)   # cat([x, skip], C)
        else:
            a1 = x_slab                                       # (R1, W+2, cin)

        # --- conv1 (3x3, pad 1): widen the kw taps into the channel axis so
        #     the contraction is K = 3*cin -> 3 matmuls instead of 9. ---
        a1w = jnp.concatenate(
            [a1[:, 0:W, :], a1[:, 1:W + 1, :], a1[:, 2:W + 2, :]], axis=-1)
        acc1 = jnp.zeros((R2 * W, c1), jnp.float32)
        for kh in range(3):                                   # static unroll
            lhs = a1w[kh:kh + R2].reshape(R2 * W, 3 * cin)
            acc1 = acc1 + jnp.dot(lhs, w1_ref[kh],
                                  preferred_element_type=jnp.float32)
        mid = jnp.maximum(acc1 * s1_ref[...] + b1_ref[...], 0.0)   # BN+ReLU, f32
        mid = mid.reshape(R2, W, c1)
        # halo rows that fall outside the image are conv2's *zero* padding
        mrow = r0 - 1 + jax.lax.broadcasted_iota(jnp.int32, (R2, 1, 1), 0)
        mid = jnp.where((mrow >= 0) & (mrow < H), mid, 0.0).astype(jnp.bfloat16)

        # --- conv2 (3x3, pad 1): same widened-K scheme; the Cout=c1
        #     intermediate stays in VMEM (never written to HBM). ---
        zcol = jnp.zeros((R2, 1, c1), jnp.bfloat16)
        midp = jnp.concatenate([zcol, mid, zcol], axis=1)     # width pad 1
        a2w = jnp.concatenate(
            [midp[:, 0:W, :], midp[:, 1:W + 1, :], midp[:, 2:W + 2, :]], axis=-1)
        acc2 = jnp.zeros((tile_h * W, c2), jnp.float32)
        for kh in range(3):
            lhs = a2w[kh:kh + tile_h].reshape(tile_h * W, 3 * c1)
            acc2 = acc2 + jnp.dot(lhs, w2_ref[kh],
                                  preferred_element_type=jnp.float32)
        y = jnp.maximum(acc2 * s2_ref[...] + b2_ref[...], 0.0)
        # TODO(synk): Cout < 128 keeps this final store lane-sparse; a wrapper
        # side (N, H, W*Cout) output slab would make it lane-dense.
        o_ref[0] = y.reshape(tile_h, W, c2).astype(o_ref.dtype)

    return kernel


def fused_decoder_block(x, skip, params):
    """One DecoderBlock as a single fused Pallas call.
       x: (N, Hx, Wx, Cx) bf16,  skip: (N, H, W, Cs) bf16 or None."""
    (w1, s1, b1), (w2, s2, b2) = params
    N, Hx, Wx, cx = x.shape
    # PyTorch DecoderBlock.forward: upsample iff skip is None or widths differ.
    do_up = (skip is None) or (Wx != skip.shape[2])
    if do_up:
        H, W = 2 * Hx, 2 * Wx
        # Column half of the nearest-2x upsample + zero pad, done on the small
        # half-vertical-res map; the row half happens inside the kernel.
        # TODO(synk): this jnp.repeat/jnp.pad (and the skip pad below) could
        # also be folded into the kernel with in-kernel gather + edge masking.
        x_in = jnp.pad(jnp.repeat(x, 2, axis=2),
                       ((0, 0), (1, 1), (1, 1), (0, 0)))
    else:
        H, W = Hx, Wx
        x_in = jnp.pad(x, ((0, 0), (2, 2), (1, 1), (0, 0)))
    cs = 0 if skip is None else skip.shape[3]
    cin = cx + cs
    c1, c2 = w1.shape[-1], w2.shape[-1]
    assert w1.shape == (3, 3, cin, c1) and w2.shape == (3, 3, c1, c2)

    tile_h = _pick_tile_h(H)
    grid = (N, H // tile_h)
    kernel = _make_block_kernel(H, W, tile_h, cx, cs, c1, c2, do_up)

    # kernel-side parameter layout: weights (3, 3*Cin, Cout) bf16 (kw folded
    # into the K axis to match the widened activations); BN scale/bias f32.
    w1k = w1.reshape(3, 3 * cin, c1).astype(jnp.bfloat16)
    w2k = w2.reshape(3, 3 * c1, c2).astype(jnp.bfloat16)
    s1k = s1.reshape(1, c1).astype(jnp.float32)
    b1k = b1.reshape(1, c1).astype(jnp.float32)
    s2k = s2.reshape(1, c2).astype(jnp.float32)
    b2k = b2.reshape(1, c2).astype(jnp.float32)

    in_specs = [pl.BlockSpec((1, x_in.shape[1], x_in.shape[2], cx),
                             lambda n, t: (n, 0, 0, 0))]
    operands = [x_in]
    if skip is not None:
        skip_in = jnp.pad(skip, ((0, 0), (2, 2), (1, 1), (0, 0)))
        in_specs.append(pl.BlockSpec((1, H + 4, W + 2, cs),
                                     lambda n, t: (n, 0, 0, 0)))
        operands.append(skip_in)
    in_specs += [
        pl.BlockSpec((3, 3 * cin, c1), lambda n, t: (0, 0, 0)),
        pl.BlockSpec((1, c1), lambda n, t: (0, 0)),
        pl.BlockSpec((1, c1), lambda n, t: (0, 0)),
        pl.BlockSpec((3, 3 * c1, c2), lambda n, t: (0, 0, 0)),
        pl.BlockSpec((1, c2), lambda n, t: (0, 0)),
        pl.BlockSpec((1, c2), lambda n, t: (0, 0)),
    ]
    operands += [w1k, s1k, b1k, w2k, s2k, b2k]

    flops = int(2 * N * H * W * 9 * (cin * c1 + c1 * c2))
    bytes_accessed = int(sum(int(np.prod(a.shape)) * a.dtype.itemsize
                             for a in operands) + N * H * W * c2 * 2)

    return pl.pallas_call(
        kernel,
        out_shape=jax.ShapeDtypeStruct((N, H, W, c2), jnp.bfloat16),
        grid=grid,
        in_specs=in_specs,
        out_specs=pl.BlockSpec((1, tile_h, W, c2), lambda n, t: (n, t, 0, 0)),
        compiler_params=pltpu.CompilerParams(
            dimension_semantics=("parallel", "parallel"),
            vmem_limit_bytes=32 * 1024 * 1024),
        cost_estimate=pl.CostEstimate(flops=flops, transcendentals=0,
                                      bytes_accessed=bytes_accessed),
    )(*operands)


# ----------------------------------------------------------------------------
# Pure-JAX reference (same bf16-operand / f32-accumulate numerics)
# ----------------------------------------------------------------------------
def conv3x3_bn_relu_ref(x, w, scale, bias):
    y = jax.lax.conv_general_dilated(
        x.astype(jnp.bfloat16), w.astype(jnp.bfloat16),
        window_strides=(1, 1), padding="SAME",
        dimension_numbers=("NHWC", "HWIO", "NHWC"),
        preferred_element_type=jnp.float32)
    y = y * scale.reshape(1, 1, 1, -1) + bias.reshape(1, 1, 1, -1)
    return jnp.maximum(y, 0.0)


def decoder_block_ref(x, skip, params):
    (w1, s1, b1), (w2, s2, b2) = params
    if skip is None or x.shape[2] != skip.shape[2]:
        x = jnp.repeat(jnp.repeat(x, 2, axis=1), 2, axis=2)   # nearest 2x
    if skip is not None:
        x = jnp.concatenate([x, skip], axis=-1)               # attention1 = Id
    x = conv3x3_bn_relu_ref(x, w1, s1, b1)
    x = conv3x3_bn_relu_ref(x, w2, s2, b2)                    # attention2 = Id
    return x.astype(jnp.bfloat16)


# ----------------------------------------------------------------------------
# Parameters + decoder (mirrors UnetDecoder channel bookkeeping)
# ----------------------------------------------------------------------------
def make_conv_bn_params(key, cin, cout):
    kw, kg, kb, km, kv = jax.random.split(key, 5)
    w = jax.random.normal(kw, (3, 3, cin, cout), jnp.float32) / np.sqrt(9.0 * cin)
    gamma = 1.0 + 0.1 * jax.random.normal(kg, (cout,), jnp.float32)
    beta = 0.1 * jax.random.normal(kb, (cout,), jnp.float32)
    mean = 0.1 * jax.random.normal(km, (cout,), jnp.float32)
    var = 1.0 + jnp.abs(jax.random.normal(kv, (cout,), jnp.float32))
    eps = 1e-5
    scale = gamma / jnp.sqrt(var + eps)        # fold BN (inference semantics)
    bias = beta - mean * scale
    return w, scale, bias


class UnetDecoderPallas:
    """UnetDecoder with center=False, use_batchnorm=True, attention_type=None.
    center == Identity and both attentions == Identity, so each block is
    upsample -> concat -> Conv2dReLU -> Conv2dReLU (one fused Pallas kernel)."""

    def __init__(self, encoder_channels, decoder_channels, key):
        enc = list(encoder_channels)[1:][::-1]
        head_channels = enc[0]
        in_channels = [head_channels] + list(decoder_channels[:-1])
        skip_channels = list(enc[1:]) + [0]
        out_channels = list(decoder_channels)
        self.block_params = []
        for ic, sc, oc in zip(in_channels, skip_channels, out_channels):
            key, k1, k2 = jax.random.split(key, 3)
            p1 = make_conv_bn_params(k1, ic + sc, oc)
            p2 = make_conv_bn_params(k2, oc, oc)
            self.block_params.append((p1, p2))
        # center == nn.Identity()

    def __call__(self, *features, use_pallas=True):
        feats = [f.astype(jnp.bfloat16) for f in features[1:][::-1]]
        head, skips = feats[0], feats[1:]
        x = head                                   # center = Identity
        block_fn = fused_decoder_block if use_pallas else decoder_block_ref
        for i, params in enumerate(self.block_params):
            skip = skips[i] if i < len(skips) else None
            x = block_fn(x, skip, params)
        return x


# ----------------------------------------------------------------------------
# Main
# ----------------------------------------------------------------------------
if __name__ == "__main__":
    key = jax.random.PRNGKey(0)
    N = 2
    encoder_channels = (3, 8, 16, 32)      # encoder outputs (shallow -> deep)
    decoder_channels = (16, 8, 8)          # n_blocks = 3

    k0, k1, k2, k3, kparams = jax.random.split(key, 5)
    # PyTorch-style NCHW encoder features; features[0] is dropped by forward().
    f0 = jax.random.normal(k0, (N, 3, 32, 32), jnp.float32)    # unused
    f1 = jax.random.normal(k1, (N, 8, 16, 16), jnp.float32)    # skip (block 2)
    f2 = jax.random.normal(k2, (N, 16, 8, 8), jnp.float32)     # skip (block 1)
    f3 = jax.random.normal(k3, (N, 32, 4, 4), jnp.float32)     # head

    decoder = UnetDecoderPallas(encoder_channels, decoder_channels, kparams)

    # NCHW -> NHWC for the kernels.
    feats_nhwc = [jnp.transpose(f, (0, 2, 3, 1)) for f in (f0, f1, f2, f3)]

    out_nhwc = decoder(*feats_nhwc, use_pallas=True)
    out = jnp.transpose(out_nhwc, (0, 3, 1, 2)).astype(jnp.float32)
    jax.block_until_ready(out)

    # Correctness check against a pure-JAX reference of the same decoder.
    ref_nhwc = decoder(*feats_nhwc, use_pallas=False)
    ref = jnp.transpose(ref_nhwc, (0, 3, 1, 2)).astype(jnp.float32)
    jax.block_until_ready(ref)

    assert out.shape == (N, decoder_channels[-1], 32, 32), out.shape
    np.testing.assert_allclose(np.asarray(out), np.asarray(ref),
                               rtol=2e-2, atol=2e-2)
    print("KERNEL_OK")
</pallas_src>

<mosaic_0001>
module attributes {stable_mosaic.version = 11 : i64} {
  func.func @kernel(%arg0: i32, %arg1: i32, %arg2: memref<1x6x10x32xbf16, #tpu.memory_space<vmem>>, %arg3: memref<1x12x10x16xbf16, #tpu.memory_space<vmem>>, %arg4: memref<3x144x16xbf16, #tpu.memory_space<vmem>>, %arg5: memref<1x16xf32, #tpu.memory_space<vmem>>, %arg6: memref<1x16xf32, #tpu.memory_space<vmem>>, %arg7: memref<3x48x16xbf16, #tpu.memory_space<vmem>>, %arg8: memref<1x16xf32, #tpu.memory_space<vmem>>, %arg9: memref<1x16xf32, #tpu.memory_space<vmem>>, %arg10: memref<1x4x8x16xbf16, #tpu.memory_space<vmem>>) attributes {dimension_semantics = [#tpu.dimension_semantics<parallel>, #tpu.dimension_semantics<parallel>], iteration_bounds = array<i64: 2, 2>, scalar_prefetch = 0 : i64, scratch_operands = 0 : i64, tpu.core_type = #tpu.core_type<tc>, window_params = [{transform_indices = @transform_0, window_bounds = array<i64: 1, 6, 10, 32>}, {transform_indices = @transform_1, window_bounds = array<i64: 1, 12, 10, 16>}, {pipeline_mode = #tpu.pipeline_mode<synchronous>, transform_indices = @transform_2, window_bounds = array<i64: 3, 144, 16>}, {pipeline_mode = #tpu.pipeline_mode<synchronous>, transform_indices = @transform_3, window_bounds = array<i64: 1, 16>}, {pipeline_mode = #tpu.pipeline_mode<synchronous>, transform_indices = @transform_4, window_bounds = array<i64: 1, 16>}, {pipeline_mode = #tpu.pipeline_mode<synchronous>, transform_indices = @transform_5, window_bounds = array<i64: 3, 48, 16>}, {pipeline_mode = #tpu.pipeline_mode<synchronous>, transform_indices = @transform_6, window_bounds = array<i64: 1, 16>}, {pipeline_mode = #tpu.pipeline_mode<synchronous>, transform_indices = @transform_7, window_bounds = array<i64: 1, 16>}, {transform_indices = @transform_8, window_bounds = array<i64: 1, 4, 8, 16>}]} {
    %c4_i32 = arith.constant 4 : i32
    %0 = arith.muli %arg1, %c4_i32 : i32
    %1 = tpu.assume_multiple %0, 4 : i32
    %c2_i32 = arith.constant 2 : i32
    %2 = arith.muli %arg1, %c2_i32 : i32
    %c0 = arith.constant 0 : index
    %3 = arith.index_cast %2 : i32 to index
    %c0_0 = arith.constant 0 : index
    %c0_1 = arith.constant 0 : index
    %4 = vector.load %arg2[%c0, %3, %c0_0, %c0_1] : memref<1x6x10x32xbf16, #tpu.memory_space<vmem>>, vector<1x4x10x32xbf16>
    %5 = vector.shape_cast %4 : vector<1x4x10x32xbf16> to vector<4x10x32xbf16>
    %6 = vector.shape_cast %5 : vector<4x10x32xbf16> to vector<4x1x10x32xbf16>
    %7 = vector.broadcast %6 : vector<4x1x10x32xbf16> to vector<4x2x10x32xbf16>
    %8 = vector.shape_cast %7 : vector<4x2x10x32xbf16> to vector<8x10x32xbf16>
    %c0_2 = arith.constant 0 : index
    %9 = arith.index_cast %1 : i32 to index
    %c0_3 = arith.constant 0 : index
    %c0_4 = arith.constant 0 : index
    %10 = vector.load %arg3[%c0_2, %9, %c0_3, %c0_4] : memref<1x12x10x16xbf16, #tpu.memory_space<vmem>>, vector<1x8x10x16xbf16>
    %11 = vector.shape_cast %10 : vector<1x8x10x16xbf16> to vector<8x10x16xbf16>
    %12 = tpu.concatenate %8, %11 in 2 : vector<8x10x32xbf16>, vector<8x10x16xbf16> -> vector<8x10x48xbf16>
    %13 = vector.extract_strided_slice %12 {offsets = [0, 0, 0], sizes = [8, 8, 48], strides = [1, 1, 1]} : vector<8x10x48xbf16> to vector<8x8x48xbf16>
    %14 = vector.extract_strided_slice %12 {offsets = [0, 1, 0], sizes = [8, 8, 48], strides = [1, 1, 1]} : vector<8x10x48xbf16> to vector<8x8x48xbf16>
    %15 = vector.extract_strided_slice %12 {offsets = [0, 2, 0], sizes = [8, 8, 48], strides = [1, 1, 1]} : vector<8x10x48xbf16> to vector<8x8x48xbf16>
    %16 = tpu.concatenate %13, %14, %15 in 2 : vector<8x8x48xbf16>, vector<8x8x48xbf16>, vector<8x8x48xbf16> -> vector<8x8x144xbf16>
    %cst = arith.constant 0.000000e+00 : f32
    %17 = vector.broadcast %cst : f32 to vector<48x16xf32>
    %18 = vector.extract_strided_slice %16 {offsets = [0, 0, 0], sizes = [6, 8, 144], strides = [1, 1, 1]} : vector<8x8x144xbf16> to vector<6x8x144xbf16>
    %19 = vector.shape_cast %18 : vector<6x8x144xbf16> to vector<48x144xbf16>
    %c0_5 = arith.constant 0 : index
    %c0_6 = arith.constant 0 : index
    %c0_7 = arith.constant 0 : index
    %20 = vector.load %arg4[%c0_5, %c0_6, %c0_7] : memref<3x144x16xbf16, #tpu.memory_space<vmem>>, vector<1x144x16xbf16>
    %21 = vector.shape_cast %20 : vector<1x144x16xbf16> to vector<144x16xbf16>
    %cst_8 = arith.constant dense<0.000000e+00> : vector<48x16xf32>
    %22 = tpu.matmul %19, %21, %cst_8 {dimension_numbers = #tpu.dot_dimension_numbers<[1], [0], [0], [1], [0, 0, 1, 1], [], []>} : vector<48x144xbf16>, vector<144x16xbf16>, vector<48x16xf32> -> vector<48x16xf32>
    %23 = arith.addf %17, %22 : vector<48x16xf32>
    %24 = vector.extract_strided_slice %16 {offsets = [1, 0, 0], sizes = [6, 8, 144], strides = [1, 1, 1]} : vector<8x8x144xbf16> to vector<6x8x144xbf16>
    %25 = vector.shape_cast %24 : vector<6x8x144xbf16> to vector<48x144xbf16>
    %c1 = arith.constant 1 : index
    %c0_9 = arith.constant 0 : index
    %c0_10 = arith.constant 0 : index
    %26 = vector.load %arg4[%c1, %c0_9, %c0_10] : memref<3x144x16xbf16, #tpu.memory_space<vmem>>, vector<1x144x16xbf16>
    %27 = vector.shape_cast %26 : vector<1x144x16xbf16> to vector<144x16xbf16>
    %cst_11 = arith.constant dense<0.000000e+00> : vector<48x16xf32>
    %28 = tpu.matmul %25, %27, %cst_11 {dimension_numbers = #tpu.dot_dimension_numbers<[1], [0], [0], [1], [0, 0, 1, 1], [], []>} : vector<48x144xbf16>, vector<144x16xbf16>, vector<48x16xf32> -> vector<48x16xf32>
    %29 = arith.addf %23, %28 : vector<48x16xf32>
    %30 = vector.extract_strided_slice %16 {offsets = [2, 0, 0], sizes = [6, 8, 144], strides = [1, 1, 1]} : vector<8x8x144xbf16> to vector<6x8x144xbf16>
    %31 = vector.shape_cast %30 : vector<6x8x144xbf16> to vector<48x144xbf16>
    %c2 = arith.constant 2 : index
    %c0_12 = arith.constant 0 : index
    %c0_13 = arith.constant 0 : index
    %32 = vector.load %arg4[%c2, %c0_12, %c0_13] : memref<3x144x16xbf16, #tpu.memory_space<vmem>>, vector<1x144x16xbf16>
    %33 = vector.shape_cast %32 : vector<1x144x16xbf16> to vector<144x16xbf16>
    %cst_14 = arith.constant dense<0.000000e+00> : vector<48x16xf32>
    %34 = tpu.matmul %31, %33, %cst_14 {dimension_numbers = #tpu.dot_dimension_numbers<[1], [0], [0], [1], [0, 0, 1, 1], [], []>} : vector<48x144xbf16>, vector<144x16xbf16>, vector<48x16xf32> -> vector<48x16xf32>
    %35 = arith.addf %29, %34 : vector<48x16xf32>
    %c0_15 = arith.constant 0 : index
    %c0_16 = arith.constant 0 : index
    %36 = vector.load %arg5[%c0_15, %c0_16] : memref<1x16xf32, #tpu.memory_space<vmem>>, vector<1x16xf32>
    %37 = vector.broadcast %36 : vector<1x16xf32> to vector<48x16xf32>
    %38 = arith.mulf %35, %37 : vector<48x16xf32>
    %c0_17 = arith.constant 0 : index
    %c0_18 = arith.constant 0 : index
    %39 = vector.load %arg6[%c0_17, %c0_18] : memref<1x16xf32, #tpu.memory_space<vmem>>, vector<1x16xf32>
    %40 = vector.broadcast %39 : vector<1x16xf32> to vector<48x16xf32>
    %41 = arith.addf %38, %40 : vector<48x16xf32>
    %cst_19 = arith.constant 0.000000e+00 : f32
    %42 = vector.broadcast %cst_19 : f32 to vector<48x16xf32>
    %43 = arith.maximumf %41, %42 : vector<48x16xf32>
    %44 = vector.shape_cast %43 : vector<48x16xf32> to vector<6x8x16xf32>
    %c1_i32 = arith.constant 1 : i32
    %45 = arith.subi %1, %c1_i32 : i32
    %46 = tpu.iota {dimensions = array<i32: 0>} : vector<6x1x1xi32>
    %47 = vector.broadcast %45 : i32 to vector<6x1x1xi32>
    %48 = arith.addi %47, %46 : vector<6x1x1xi32>
    %c0_i32 = arith.constant 0 : i32
    %49 = vector.broadcast %c0_i32 : i32 to vector<6x1x1xi32>
    %50 = arith.cmpi sge, %48, %49 : vector<6x1x1xi32>
    %c8_i32 = arith.constant 8 : i32
    %51 = vector.broadcast %c8_i32 : i32 to vector<6x1x1xi32>
    %52 = arith.cmpi slt, %48, %51 : vector<6x1x1xi32>
    %53 = arith.andi %50, %52 : vector<6x1x1xi1>
    %cst_20 = arith.constant 0.000000e+00 : f32
    %54 = vector.shape_cast %53 : vector<6x1x1xi1> to vector<6x1x1xi1>
    %55 = vector.broadcast %54 : vector<6x1x1xi1> to vector<6x8x16xi1>
    %56 = vector.broadcast %cst_20 : f32 to vector<6x8x16xf32>
    %57 = arith.select %55, %44, %56 : vector<6x8x16xi1>, vector<6x8x16xf32>
    %58 = arith.truncf %57 : vector<6x8x16xf32> to vector<6x8x16xbf16>
    %cst_21 = arith.constant 0.000000e+00 : bf16
    %59 = vector.broadcast %cst_21 : bf16 to vector<6x1x16xbf16>
    %60 = tpu.concatenate %59, %58, %59 in 1 : vector<6x1x16xbf16>, vector<6x8x16xbf16>, vector<6x1x16xbf16> -> vector<6x10x16xbf16>
    %61 = vector.extract_strided_slice %60 {offsets = [0, 0, 0], sizes = [6, 8, 16], strides = [1, 1, 1]} : vector<6x10x16xbf16> to vector<6x8x16xbf16>
    %62 = vector.extract_strided_slice %60 {offsets = [0, 1, 0], sizes = [6, 8, 16], strides = [1, 1, 1]} : vector<6x10x16xbf16> to vector<6x8x16xbf16>
    %63 = vector.extract_strided_slice %60 {offsets = [0, 2, 0], sizes = [6, 8, 16], strides = [1, 1, 1]} : vector<6x10x16xbf16> to vector<6x8x16xbf16>
    %64 = tpu.concatenate %61, %62, %63 in 2 : vector<6x8x16xbf16>, vector<6x8x16xbf16>, vector<6x8x16xbf16> -> vector<6x8x48xbf16>
    %cst_22 = arith.constant 0.000000e+00 : f32
    %65 = vector.broadcast %cst_22 : f32 to vector<32x16xf32>
    %66 = vector.extract_strided_slice %64 {offsets = [0, 0, 0], sizes = [4, 8, 48], strides = [1, 1, 1]} : vector<6x8x48xbf16> to vector<4x8x48xbf16>
    %67 = vector.shape_cast %66 : vector<4x8x48xbf16> to vector<32x48xbf16>
    %c0_23 = arith.constant 0 : index
    %c0_24 = arith.constant 0 : index
    %c0_25 = arith.constant 0 : index
    %68 = vector.load %arg7[%c0_23, %c0_24, %c0_25] : memref<3x48x16xbf16, #tpu.memory_space<vmem>>, vector<1x48x16xbf16>
    %69 = vector.shape_cast %68 : vector<1x48x16xbf16> to vector<48x16xbf16>
    %cst_26 = arith.constant dense<0.000000e+00> : vector<32x16xf32>
    %70 = tpu.matmul %67, %69, %cst_26 {dimension_numbers = #tpu.dot_dimension_numbers<[1], [0], [0], [1], [0, 0, 1, 1], [], []>} : vector<32x48xbf16>, vector<48x16xbf16>, vector<32x16xf32> -> vector<32x16xf32>
    %71 = arith.addf %65, %70 : vector<32x16xf32>
    %72 = vector.extract_strided_slice %64 {offsets = [1, 0, 0], sizes = [4, 8, 48], strides = [1, 1, 1]} : vector<6x8x48xbf16> to vector<4x8x48xbf16>
    %73 = vector.shape_cast %72 : vector<4x8x48xbf16> to vector<32x48xbf16>
    %c1_27 = arith.constant 1 : index
    %c0_28 = arith.constant 0 : index
    %c0_29 = arith.constant 0 : index
    %74 = vector.load %arg7[%c1_27, %c0_28, %c0_29] : memref<3x48x16xbf16, #tpu.memory_space<vmem>>, vector<1x48x16xbf16>
    %75 = vector.shape_cast %74 : vector<1x48x16xbf16> to vector<48x16xbf16>
    %cst_30 = arith.constant dense<0.000000e+00> : vector<32x16xf32>
    %76 = tpu.matmul %73, %75, %cst_30 {dimension_numbers = #tpu.dot_dimension_numbers<[1], [0], [0], [1], [0, 0, 1, 1], [], []>} : vector<32x48xbf16>, vector<48x16xbf16>, vector<32x16xf32> -> vector<32x16xf32>
    %77 = arith.addf %71, %76 : vector<32x16xf32>
    %78 = vector.extract_strided_slice %64 {offsets = [2, 0, 0], sizes = [4, 8, 48], strides = [1, 1, 1]} : vector<6x8x48xbf16> to vector<4x8x48xbf16>
    %79 = vector.shape_cast %78 : vector<4x8x48xbf16> to vector<32x48xbf16>
    %c2_31 = arith.constant 2 : index
    %c0_32 = arith.constant 0 : index
    %c0_33 = arith.constant 0 : index
    %80 = vector.load %arg7[%c2_31, %c0_32, %c0_33] : memref<3x48x16xbf16, #tpu.memory_space<vmem>>, vector<1x48x16xbf16>
    %81 = vector.shape_cast %80 : vector<1x48x16xbf16> to vector<48x16xbf16>
    %cst_34 = arith.constant dense<0.000000e+00> : vector<32x16xf32>
    %82 = tpu.matmul %79, %81, %cst_34 {dimension_numbers = #tpu.dot_dimension_numbers<[1], [0], [0], [1], [0, 0, 1, 1], [], []>} : vector<32x48xbf16>, vector<48x16xbf16>, vector<32x16xf32> -> vector<32x16xf32>
    %83 = arith.addf %77, %82 : vector<32x16xf32>
    %c0_35 = arith.constant 0 : index
    %c0_36 = arith.constant 0 : index
    %84 = vector.load %arg8[%c0_35, %c0_36] : memref<1x16xf32, #tpu.memory_space<vmem>>, vector<1x16xf32>
    %85 = vector.broadcast %84 : vector<1x16xf32> to vector<32x16xf32>
    %86 = arith.mulf %83, %85 : vector<32x16xf32>
    %c0_37 = arith.constant 0 : index
    %c0_38 = arith.constant 0 : index
    %87 = vector.load %arg9[%c0_37, %c0_38] : memref<1x16xf32, #tpu.memory_space<vmem>>, vector<1x16xf32>
    %88 = vector.broadcast %87 : vector<1x16xf32> to vector<32x16xf32>
    %89 = arith.addf %86, %88 : vector<32x16xf32>
    %cst_39 = arith.constant 0.000000e+00 : f32
    %90 = vector.broadcast %cst_39 : f32 to vector<32x16xf32>
    %91 = arith.maximumf %89, %90 : vector<32x16xf32>
    %92 = vector.shape_cast %91 : vector<32x16xf32> to vector<4x8x16xf32>
    %93 = arith.truncf %92 : vector<4x8x16xf32> to vector<4x8x16xbf16>
    %c0_40 = arith.constant 0 : index
    %c0_41 = arith.constant 0 : index
    %c0_42 = arith.constant 0 : index
    %c0_43 = arith.constant 0 : index
    %94 = vector.load %arg10[%c0_40, %c0_41, %c0_42, %c0_43] : memref<1x4x8x16xbf16, #tpu.memory_space<vmem>>, vector<1x4x8x16xbf16>
    %95 = vector.shape_cast %94 : vector<1x4x8x16xbf16> to vector<4x8x16xbf16>
    %96 = vector.shape_cast %93 : vector<4x8x16xbf16> to vector<1x4x8x16xbf16>
    tpu.vector_store %arg10[%c0_40, %c0_41, %c0_42, %c0_43], %96 {strides = array<i32>} : memref<1x4x8x16xbf16, #tpu.memory_space<vmem>>, vector<1x4x8x16xbf16>,
    return
  }
  func.func @transform_0(%arg0: i32, %arg1: i32) -> (i32, i32, i32, i32) {
    %c0_i32 = arith.constant 0 : i32
    %c0_i32_0 = arith.constant 0 : i32
    %c0_i32_1 = arith.constant 0 : i32
    %c0_i32_2 = arith.constant 0 : i32
    return %arg0, %c0_i32, %c0_i32_0, %c0_i32_1 : i32, i32, i32, i32
  }
  func.func @transform_1(%arg0: i32, %arg1: i32) -> (i32, i32, i32, i32) {
    %c0_i32 = arith.constant 0 : i32
    %c0_i32_0 = arith.constant 0 : i32
    %c0_i32_1 = arith.constant 0 : i32
    %c0_i32_2 = arith.constant 0 : i32
    return %arg0, %c0_i32, %c0_i32_0, %c0_i32_1 : i32, i32, i32, i32
  }
  func.func @transform_2(%arg0: i32, %arg1: i32) -> (i32, i32, i32) {
    %c0_i32 = arith.constant 0 : i32
    %c0_i32_0 = arith.constant 0 : i32
    %c0_i32_1 = arith.constant 0 : i32
    %c0_i32_2 = arith.constant 0 : i32
    return %c0_i32, %c0_i32_0, %c0_i32_1 : i32, i32, i32
  }
  func.func @transform_3(%arg0: i32, %arg1: i32) -> (i32, i32) {
    %c0_i32 = arith.constant 0 : i32
    %c0_i32_0 = arith.constant 0 : i32
    %c0_i32_1 = arith.constant 0 : i32
    return %c0_i32, %c0_i32_0 : i32, i32
  }
  func.func @transform_4(%arg0: i32, %arg1: i32) -> (i32, i32) {
    %c0_i32 = arith.constant 0 : i32
    %c0_i32_0 = arith.constant 0 : i32
    %c0_i32_1 = arith.constant 0 : i32
    return %c0_i32, %c0_i32_0 : i32, i32
  }
  func.func @transform_5(%arg0: i32, %arg1: i32) -> (i32, i32, i32) {
    %c0_i32 = arith.constant 0 : i32
    %c0_i32_0 = arith.constant 0 : i32
    %c0_i32_1 = arith.constant 0 : i32
    %c0_i32_2 = arith.constant 0 : i32
    return %c0_i32, %c0_i32_0, %c0_i32_1 : i32, i32, i32
  }
  func.func @transform_6(%arg0: i32, %arg1: i32) -> (i32, i32) {
    %c0_i32 = arith.constant 0 : i32
    %c0_i32_0 = arith.constant 0 : i32
    %c0_i32_1 = arith.constant 0 : i32
    return %c0_i32, %c0_i32_0 : i32, i32
  }
  func.func @transform_7(%arg0: i32, %arg1: i32) -> (i32, i32) {
    %c0_i32 = arith.constant 0 : i32
    %c0_i32_0 = arith.constant 0 : i32
    %c0_i32_1 = arith.constant 0 : i32
    return %c0_i32, %c0_i32_0 : i32, i32
  }
  func.func @transform_8(%arg0: i32, %arg1: i32) -> (i32, i32, i32, i32) {
    %c0_i32 = arith.constant 0 : i32
    %c0_i32_0 = arith.constant 0 : i32
    %c0_i32_1 = arith.constant 0 : i32
    return %arg0, %arg1, %c0_i32, %c0_i32_0 : i32, i32, i32, i32
  }
}

</mosaic_0001>

<bundles_post_ra>
// kernel: tpu_custom_call.1
= control target key start
LH: loop header
LB: loop body
LE: loop exit
PB: predicated region body
PF: predicated region fallthrough
CT: control target
= control target key end

     0   :  { %13 = vsyncpa [#allocation3], 0  ;;  %s2742_s0 = inlined_call_operand.vmem [shape: bf16[2,6,10,32], index: 0, kind: input, shape index: {}]   ;;  %s2743_s1 = inlined_call_operand.vmem [shape: bf16[2,12,10,16], index: 1, kind: input, shape index: {}]   ;;  %s2744_s2 = inlined_call_operand.vmem [shape: bf16[3,144,16], index: 2, kind: input, shape index: {}]   ;;  %s2745_s3 = inlined_call_operand.vmem [shape: f32[1,16], index: 3, kind: input, shape index: {}]   ;;  %s2746_s4 = inlined_call_operand.vmem [shape: f32[1,16], index: 4, kind: input, shape index: {}]   ;;  %s2747_s5 = inlined_call_operand.vmem [shape: bf16[3,48,16], index: 5, kind: input, shape index: {}]   ;;  %s2748_s6 = inlined_call_operand.vmem [shape: f32[1,16], index: 6, kind: input, shape index: {}]   ;;  %s2749_s7 = inlined_call_operand.vmem [shape: f32[1,16], index: 7, kind: input, shape index: {}]   ;;  %s2750_s8 = inlined_call_operand.hbm [shape: bf16[2,8,8,16], index: 8, kind: output, shape index: {}]  }
   0x1   :  { %15 = vsyncpa [#allocation3 + $0x1], 0  ;;  %s2217_s27 = smov 0   ;;  %s2219_s28 = smov 0  }
   0x2   :  { %s2221_s29 = smov 0   ;;  %s2223_s30 = smov 0  }
   0x3   :  { %s2225_s9 = smov 0   ;;  %s2227_s10 = smov 0  }
   0x4   :  { %s2229_s11 = smov 0   ;;  %s2231_s12 = smov 0  }
   0x5 LB: > { %2755 = sst [smem:[#allocation5_spill]] %s2154_s10  ;;  %s1710_s13 = sadd.s32 4294967295, %s2162_s12   ;;  %s2162_s12 = sphi %s2231_s12, %s21_s12   ;;  %s2158_s11 = sphi %s2229_s11, %s2768_s11   ;;  %s2154_s10 = sphi %s2227_s10, %s2767_s10   ;;  %s2150_s9 = sphi %s2225_s9, %s2766_s9   ;;  %s2146_s30 = sphi %s2223_s30, %s2765_s30   ;;  %s2142_s29 = sphi %s2221_s29, %s2771_s29   ;;  %s2138_s28 = sphi %s2219_s28, %s2770_s28   ;;  %s2134_s27 = sphi %s2217_s27, %s2769_s27  }
   0x6   : > { %2756 = sst [smem:[#allocation6_spill]] %s2158_s11  ;;  %s1711_s14 = sadd.s32 4294967294, %s2162_s12  }
   0x7   : > { %s30_s15 = sadd.s32 1, %s2154_s10  ;;  %s33_s16 = sadd.s32 1, %s2158_s11 }
   0x8   : > { %p31_p0 = scmp.ge.s32.totalorder %s30_s15, 2  ;;  %p230_p1 = scmp.ne.s32.totalorder %s2142_s29, %s2138_s28 }
   0x9   : > { %p231_p2 = scmp.eq.s32.totalorder %s1710_s13, 3  ;;  %p236_p5 = scmp.ne.s32.totalorder %s2138_s28, %s2134_s27 }
   0xa   : > { %s2773_s15 = smov (%p31_p0, %s30_s15), 0  ;;  %s2775_s16 = smov (!%p31_p0, %s33_s16), %s2158_s11 }
   0xb   : > { %2757 = sst [smem:[#allocation7_spill]] %s2773_s15  ;;  %s216_s17 = ssub.s32 %s2154_s10, %s2773_s15 }
   0xc   : > { %p2268_p3 = por %p231_p2, %p230_p1  ;;  %p35_p4 = scmp.ge.s32.totalorder %s2775_s16, 2 }
   0xd   : > { %p237_p6 = scmp.eq.s32.totalorder %s1711_s14, 3  ;;  %p1714_p7 = scmp.ge.s32.totalorder %s2162_s12, 1 }
   0xe   : > { %s2777_s16 = smov (%p35_p4, %s2775_s16), 0  ;;  %p289_p9 = scmp.lt.s32.totalorder %s2162_s12, 5 }
   0xf   : > { %2759 = sst [smem:[#allocation8_spill]] %s2777_s16  ;;  %p2277_p8 = por %p237_p6, %p236_p5 }
  0x10   : > { %s215_s20 = ssub.s32 %s2158_s11, %s2777_s16  ;;  %s220_s21 = sadd.s32 1, %s2142_s29 }
  0x11   : > { %s217_s22 = sor.u32 %s216_s17, %s215_s20  ;;  %p290_p10 = pnand %p1714_p7, %p289_p9 }
  0x12   : > { %p218_p11 = scmp.eq.s32.totalorder %s217_s22, 0  ;;  %p328_p12 = scmp.lt.s32.totalorder (!%p290_p10), %s2150_s9, 1  ;;  %v2032_v8 = vld [vmem:[%s2744_s2] sm:$0xff] (!%p290_p10)   ;;  %v2034_v9 = vld [vmem:[%s2744_s2 + $0x48] sm:$0xff] (!%p290_p10)   ;;  %v2165_v10 = vmov (!%p290_p10), 0   ;;  %v2036_v12 = vld [vmem:[%s2744_s2 + $0x50] sm:$0xff] (!%p290_p10)  }
  0x13   : > { %293 = sbr.rel (%p290_p10) target bundleno = 954 (0x3ba), region = 52  ;;  %s1868_s26 = sshll.u32 (!%p290_p10), %s2146_s30, 5  ;;  %859 = vmatprep.subr.bf16.mxu0 (!%p290_p10), %v2165_v10  ;;  %730 = vmatprep.subr.bf16.mxu1 (!%p290_p10), %v2165_v10  ;;  %v2033_v11 = vld [vmem:[%s2744_s2 + $0x8] sm:$0xff] (!%p290_p10)   ;;  %v2035_v13 = vld [vmem:[%s2744_s2 + $0x10] sm:$0xff] (!%p290_p10)   ;;  %v2038_v14 = vld [vmem:[%s2744_s2 + $0x58] sm:$0xff] (!%p290_p10)   ;;  %vm448_vm0 = vcmask (!%p290_p10), 261120  }
  0x14   : > { %s2286_s23 = scalar_select %p218_p11, %s2142_s29, %s220_s21  }
  0x15   : > { %s2164_s17 = smov (!%p290_p10), 32   ;;  %s1866_s20 = sshll.u32 (!%p290_p10), %s2146_s30, 4  ;;  %860 = vmatpush1.bf16.msra.mxu0 (!%p290_p10), %v2032_v8  ;;  %731 = vmatpush1.bf16.msra.mxu1 (!%p290_p10), %v2034_v9  ;;  %v2037_v15 = vld [vmem:[%s2744_s2 + $0x18] sm:$0xff] (!%p290_p10)   ;;  %v2040_v16 = vld [vmem:[%s2744_s2 + $0x60] sm:$0xff] (!%p290_p10)   ;;  %v2042_v18 = vld [vmem:[%s2744_s2 + $0x68] sm:$0xff] (!%p290_p10)   ;;  %vm565_vm1 = vcmask (!%p290_p10), 392192  }
  0x16   : > { %861 = vmatprep.subr.bf16.mxu0 (!%p290_p10), %v2165_v10  ;;  %732 = vmatprep.subr.bf16.mxu1 (!%p290_p10), %v2165_v10  ;;  %v2039_v17 = vld [vmem:[%s2744_s2 + $0x20] sm:$0xff] (!%p290_p10)   ;;  %v2041_v19 = vld [vmem:[%s2744_s2 + $0x28] sm:$0xff] (!%p290_p10)   ;;  %v2043_v20 = vld [vmem:[%s2744_s2 + $0x30] sm:$0xff] (!%p290_p10)   ;;  %vm582_vm2 = vcmask (!%p290_p10), 785408   ;;  %vm720_vm3 = vcmask (!%p290_p10), 130048   ;;  %s1718_s22 = sshll.u32 (!%p290_p10), %s2146_s30, 2 }
  0x17   : > { %v2044_v21 = vld [vmem:[%s2744_s2 + $0x70] sm:$0xff] (!%p290_p10)   ;;  %v2045_v22 = vld [vmem:[%s2744_s2 + $0x38] sm:$0xff] (!%p290_p10)   ;;  %v2047_v26 = vld [vmem:[%s2744_s2 + $0x40] sm:$0xff] (!%p290_p10)   ;;  %vm1190_vm15 = vcmask (!%p290_p10), 1040384  }
  0x18   : > { %v2046_v24 = vld [vmem:[%s2744_s2 + $0x78] sm:$0xff] (!%p290_p10)   ;;  %v2048_v29 = vld [vmem:[%s2744_s2 + $0x80] sm:$0xff] (!%p290_p10)   ;;  %v2050_v42 = vld [vmem:[%s2744_s2 + $0x88] sm:$0xff] (!%p290_p10)  }
  0x19   : > { %862 = vmatpush1.bf16.msra.mxu0 (!%p290_p10), %v2033_v11  ;;  %733 = vmatpush1.bf16.msra.mxu1 (!%p290_p10), %v2036_v12 }
  0x1a   : > { %s329_s24 = scalar_select %p328_p12, %s2150_s9, 1  ;;  %863 = vmatprep.subr.bf16.mxu0 %v2165_v10  ;;  %734 = vmatprep.subr.bf16.mxu1 %v2165_v10 }
  0x1c   : > { %s1941_s25 = smul.u32 96, %s329_s24 }
  0x1d   : > { %s1940_s13 = smul.u32 48, %s329_s24  ;;  %864 = vmatpush1.bf16.msra.mxu0 %v2035_v13  ;;  %735 = vmatpush1.bf16.msra.mxu1 %v2038_v14 }
  0x1e   : > { %s337_s16 = scalar_lea.vmem %s2743_s1, %s1941_s25  ;;  %865 = vmatprep.subr.bf16.mxu0 %v2165_v10  ;;  %736 = vmatprep.subr.bf16.mxu1 %v2165_v10  ;;  %s2169_s25 = smov [#allocation2]  }
  0x1f   : > { %s355_s11 = scalar_lea.vmem %s337_s16, %s1868_s26  ;;  %s332_s10 = scalar_lea.vmem %s2742_s0, %s1940_s13 }
  0x20   : > { %v2020_v0 = vld [vmem:[%s355_s11] sm:$0x1f]   ;;  %v2021_v1 = vld [vmem:[%s355_s11 + $0x8] sm:$0x1f]   ;;  %v2022_v2 = vld [vmem:[%s355_s11 + $0x10] sm:$0x1f]   ;;  %s2301_s15 = scalar_lea.vmem %s332_s10, %s1866_s20 }
  0x21   : > { %432 = vrot.lane.b32.xlu0 %v2020_v0, %s2164_s17  ;;  %436 = vrot.lane.b32.xlu1 %v2022_v2, %s2164_s17  ;;  %v2023_v3 = vld [vmem:[%s355_s11 + $0x18] sm:$0x1f]   ;;  %v2024_v4 = vld [vmem:[%s355_s11 + $0x20] sm:$0x1f]   ;;  %s2166_s10 = smov 48   ;;  %s2167_s26 = smov 96  }
  0x22   : > { %v2025_v5 = vld [vmem:[%s355_s11 + $0x28] sm:$0x1f]   ;;  %v2026_v6 = vld [vmem:[%s355_s11 + $0x30] sm:$0x1f]   ;;  %v2027_v7 = vld [vmem:[%s355_s11 + $0x38] sm:$0x1f]   ;;  %866 = vmatpush1.bf16.msra.mxu0 %v2037_v15  ;;  %737 = vmatpush1.bf16.msra.mxu1 %v2040_v16 }
  0x23   : > { %867 = vmatprep.subr.bf16.mxu0 %v2165_v10  ;;  %738 = vmatprep.subr.bf16.mxu1 %v2165_v10  ;;  %v2028_v23 = vld [vmem:[%s2301_s15] sm:$0x1f]   ;;  %v2029_v25 = vld [vmem:[%s2301_s15 + $0x8] sm:$0x1f]   ;;  %v2030_v38 = vld [vmem:[%s2301_s15 + $0x10] sm:$0x1f]  }
  0x24   : > { %v2031_v59 = vld [vmem:[%s2301_s15 + $0x18] sm:$0x1f]   ;;  %s1824_s16 = sadd.s32 4294967295, %s1718_s22  ;;  %s2168_s20 = smov 16  }
  0x25   : > { %434 = vrot.lane.b32.xlu0 %v2021_v1, %s2164_s17  ;;  %438 = vrot.lane.b32.xlu1 %v2023_v3, %s2164_s17  ;;  %s1861_s15 = sshll.u32 %s2150_s9, 3 }
  0x26   : > { %868 = vmatpush1.bf16.msra.mxu0 %v2039_v17  ;;  %739 = vmatpush1.bf16.msra.mxu1 %v2042_v18  ;;  %s1615_s13 = sadd.s32 %s1861_s15, %s1718_s22 }
  0x27   : > { %869 = vmatprep.subr.bf16.mxu0 %v2165_v10  ;;  %740 = vmatprep.subr.bf16.mxu1 %v2165_v10  ;;  %s1862_s9 = sshll.u32 %s1615_s13, 6 }
  0x28   : > { %s2684_s21 = scalar_lea.hbm %s2750_s8, %s1862_s9 }
  0x29   : > { %440 = vrot.lane.b32.xlu0 %v2024_v4, %s2164_s17  ;;  %442 = vrot.lane.b32.xlu1 %v2025_v5, %s2164_s17 }
  0x2a   : > { %870 = vmatpush1.bf16.msra.mxu0 %v2041_v19  ;;  %741 = vmatpush1.bf16.msra.mxu1 %v2044_v21 }
  0x2b   : > { %871 = vmatprep.subr.bf16.mxu0 %v2165_v10  ;;  %742 = vmatprep.subr.bf16.mxu1 %v2165_v10 }
  0x2d   : > { %444 = vrot.lane.b32.xlu0 %v2026_v6, %s2164_s17  ;;  %446 = vrot.lane.b32.xlu1 %v2027_v7, %s2164_s17 }
  0x2e   : > { %872 = vmatpush1.bf16.msra.mxu0 %v2043_v20  ;;  %743 = vmatpush1.bf16.msra.mxu1 %v2046_v24 }
  0x2f   : > { %873 = vmatprep.subr.bf16.mxu0 %v2165_v10  ;;  %744 = vmatprep.subr.bf16.mxu1 %v2165_v10 }
  0x32   : > { %874 = vmatpush1.bf16.msra.mxu0 %v2045_v22  ;;  %745 = vmatpush1.bf16.msra.mxu1 %v2048_v29 }
  0x33   : > { %875 = vmatprep.subr.bf16.mxu0 %v2165_v10  ;;  %746 = vmatprep.subr.bf16.mxu1 %v2165_v10 }
  0x36   : > { %876 = vmatpush1.bf16.msra.mxu0 %v2047_v26  ;;  %747 = vmatpush1.bf16.msra.mxu1 %v2050_v42  ;;  %v2051_v42 = vld [vmem:[%s2744_s2 + $0x98] sm:$0xff]  }
  0x37   : > { %998 = vmatprep.subr.bf16.mxu0 %v2165_v10 }
  0x93   : > { %v433_v27 = vpop.permute.xlu0 %432  ;;  %v437_v31 = vpop.permute.xlu1 %436 }
  0x94   : > { %v2376_v28 = vsel %vm448_vm0, %v2028_v23, %v433_v27  ;;  %v2384_v32 = vsel %vm448_vm0, %v2029_v25, %v437_v31 }
  0x95   : > { %v471_v30 = vshll.u32 %v2376_v28, 16  ;;  %v469_v33 = vshrl.u32 %v2376_v28, 16  ;;  %v483_v35 = vshll.u32 %v2384_v32, 16  ;;  %v481_v43 = vshrl.u32 %v2384_v32, 16 }
  0x96   : > { %v541_v52 = vrot.slane %v2376_v28, 1  ;;  %v543_v62 = vrot.slane %v2384_v32, 1 }
  0x97   : > { %v435_v34 = vpop.permute.xlu0 %434  ;;  %v473_v36 = vrot.slane %v471_v30, 1  ;;  %v439_v41 = vpop.permute.xlu1 %438  ;;  %v485_v49 = vrot.slane %v483_v35, 1 }
  0x98   : > { %v2390_v37 = vsel %vm448_vm0, %v2028_v23, %v435_v34  ;;  %v2399_v44 = vsel %vm448_vm0, %v2029_v25, %v439_v41 }
  0x99   : > { %v477_v39 = vshll.u32 %v2390_v37, 16  ;;  %v474_v40 = vor.u32 %v473_v36, %v469_v33  ;;  %v475_v45 = vshrl.u32 %v2390_v37, 16  ;;  %v489_v46 = vshll.u32 %v2399_v44, 16  ;;  %v2049_v36 = vld [vmem:[%s2744_s2 + $0x90] sm:$0xff]  }
  0x9a   : > { %v487_v54 = vshrl.u32 %v2399_v44, 16  ;;  %v486_v56 = vor.u32 %v485_v49, %v481_v43  ;;  %v542_v60 = vrot.slane %v2390_v37, 1  ;;  %v544_v5 = vrot.slane %v2399_v44, 1  ;;  %v2052_v49 = vld [vmem:[%s2744_s2 + $0xa0] sm:$0xff]  }
  0x9b   : > { %517 = vrot.lane.b32.xlu0 %v474_v40, %s2166_s10  ;;  %v479_v47 = vrot.slane %v477_v39, 1  ;;  %v441_v48 = vpop.permute.xlu0 %440  ;;  %v443_v53 = vpop.permute.xlu1 %442  ;;  %v491_v57 = vrot.slane %v489_v46, 1 }
  0x9c   : > { %v2405_v50 = vsel %vm448_vm0, %v2030_v38, %v441_v48  ;;  %v2413_v58 = vsel %vm448_vm0, %v2030_v38, %v443_v53 }
  0x9d   : > { %v480_v51 = vor.u32 %v479_v47, %v475_v45  ;;  %v495_v55 = vshll.u32 %v2405_v50, 16  ;;  %v493_v63 = vshrl.u32 %v2405_v50, 16  ;;  %v501_v0 = vshll.u32 %v2413_v58, 16 }
  0x9e   : > { %v492_v1 = vor.u32 %v491_v57, %v487_v54  ;;  %v499_v6 = vshrl.u32 %v2413_v58, 16  ;;  %v545_v12 = vrot.slane %v2405_v50, 1  ;;  %v546_v18 = vrot.slane %v2413_v58, 1 }
  0x9f   : > { %519 = vrot.lane.b32.xlu1 %v480_v51, %s2166_s10  ;;  %549 = vrot.lane.b32.xlu0 %v541_v52, %s2167_s26  ;;  %v445_v61 = vpop.permute.xlu0 %444  ;;  %v497_v2 = vrot.slane %v495_v55, 1  ;;  %v447_v4 = vpop.permute.xlu1 %446  ;;  %v503_v9 = vrot.slane %v501_v0, 1 }
  0xa0   : > { %v2423_v3 = vsel %vm448_vm0, %v2031_v59, %v445_v61  ;;  %v2431_v11 = vsel %vm448_vm0, %v2031_v59, %v447_v4 }
  0xa1   : > { %v507_v7 = vshll.u32 %v2423_v3, 16  ;;  %v498_v8 = vor.u32 %v497_v2, %v493_v63  ;;  %v505_v13 = vshrl.u32 %v2423_v3, 16  ;;  %v513_v14 = vshll.u32 %v2431_v11, 16  ;;  %v2054_v63 = vld [vmem:[%s2744_s2 + $0xb0] sm:$0xff]  }
  0xa2   : > { %v504_v15 = vor.u32 %v503_v9, %v499_v6  ;;  %v511_v17 = vshrl.u32 %v2431_v11, 16  ;;  %v547_v22 = vrot.slane %v2423_v3, 1  ;;  %v548_v23 = vrot.slane %v2431_v11, 1 }
  0xa3   : > { %551 = vrot.lane.b32.xlu1 %v542_v60, %s2167_s26  ;;  %521 = vrot.lane.b32.xlu0 %v486_v56, %s2166_s10  ;;  %v509_v16 = vrot.slane %v507_v7, 1  ;;  %v515_v20 = vrot.slane %v513_v14, 1  ;;  %v2053_v56 = vld [vmem:[%s2744_s2 + $0xa8] sm:$0xff]  }
  0xa4   : > { %v2057_v7 = vld [vmem:[%s2744_s2 + $0xc8] sm:$0xff]  }
  0xa5   : > { %v510_v19 = vor.u32 %v509_v16, %v505_v13  ;;  %v516_v21 = vor.u32 %v515_v20, %v511_v17 }
  0xa7   : > { %523 = vrot.lane.b32.xlu1 %v492_v1, %s2166_s10  ;;  %553 = vrot.lane.b32.xlu0 %v543_v62, %s2167_s26 }
  0xab   : > { %555 = vrot.lane.b32.xlu1 %v544_v5, %s2167_s26  ;;  %525 = vrot.lane.b32.xlu0 %v498_v8, %s2166_s10  ;;  %v2055_v5 = vld [vmem:[%s2744_s2 + $0xb8] sm:$0xff]   ;;  %v2058_v8 = vld [vmem:[%s2744_s2 + $0xd0] sm:$0xff]  }
  0xaf   : > { %527 = vrot.lane.b32.xlu1 %v504_v15, %s2166_s10  ;;  %557 = vrot.lane.b32.xlu0 %v545_v12, %s2167_s26 }
  0xb3   : > { %559 = vrot.lane.b32.xlu1 %v546_v18, %s2167_s26  ;;  %529 = vrot.lane.b32.xlu0 %v510_v19, %s2166_s10 }
  0xb7   : > { %531 = vrot.lane.b32.xlu1 %v516_v21, %s2166_s10  ;;  %561 = vrot.lane.b32.xlu0 %v547_v22, %s2167_s26  ;;  %s2072_s10 = sshll.u32 %s2169_s25, 4  ;;  %s2073_s10 = int_to_ptr.vmem [resolvable:$false] %s2072_s10 }
  0xbb   : > { %563 = vrot.lane.b32.xlu1 %v548_v23, %s2167_s26  ;;  %s2074_s26 = scalar_lea.vmem %s2073_s10, 512 }
 0x10d   : > { %v518_v24 = vpop.permute.xlu0 %517 }
 0x10e   : > { %v567_v27 = vsel %vm565_vm1, %v2376_v28, %v518_v24 }
 0x111   : > { %v520_v25 = vpop.permute.xlu1 %519  ;;  %v550_v26 = vpop.permute.xlu0 %549 }
 0x112   : > { %v569_v29 = vsel %vm565_vm1, %v2390_v37, %v520_v25  ;;  %v584_v33 = vsel %vm582_vm2, %v567_v27, %v550_v26  ;;  %v1094_v27 = vstv %s1824_s16 }
 0x113   : > { %vm1100_vm4 = vcmp.ge.s32.totalorder %v1094_v27, 0  ;;  %vm1106_vm5 = vcmp.lt.s32.totalorder %v1094_v27, 8 }
 0x114   : > { %vm1112_vm8 = vmand %vm1100_vm4, %vm1106_vm5  ;;  %vm1199_vm4 = vcmask 1044480  }
 0x115   : > { %v552_v30 = vpop.permute.xlu1 %551  ;;  %v522_v31 = vpop.permute.xlu0 %521 }
 0x116   : > { %v586_v34 = vsel %vm582_vm2, %v569_v29, %v552_v30  ;;  %v1773_v35 = vcombine.low %v550_v26, %v552_v30  ;;  %v571_v28 = vsel %vm565_vm1, %v2384_v32, %v522_v31 }
 0x117   : > { %v1772_v38 = vcombine.low %v584_v33, %v586_v34 }
 0x118   : > { %1787 = vmatprep.mubr.msk.bf16.mxu0 %vm720_vm3, %v1773_v35  ;;  %v2532_v35 = vld [vmem:[%s2746_s4] ss:$0 sm:$0xff] }
 0x119   : > { %v524_v39 = vpop.permute.xlu1 %523  ;;  %892 = vmatmul.mubr.bf16.vlgmr.msra.gmra.mrb[0].mxu0 %v1772_v38  ;;  %v554_v37 = vpop.permute.xlu0 %553 }
 0x11a   : > { %999 = vmatpush1.bf16.msra.mxu0 %v2049_v36  ;;  %v588_v40 = vsel %vm582_vm2, %v571_v28, %v554_v37  ;;  %v1755_v41 = vcombine.low %v552_v30, %v554_v37  ;;  %v573_v45 = vsel %vm565_vm1, %v2399_v44, %v524_v39  ;;  %v2527_v30 = vld [vmem:[%s2745_s3] ss:$0 sm:$0xff] }
 0x11b   : > { %1000 = vmatprep.subr.bf16.mxu0 %v2165_v10  ;;  %v1754_v43 = vcombine.low %v586_v34, %v588_v40  ;;  %v1095_v34 = vadd.s32 1, %v1094_v27 }
 0x11c   : > { %1769 = vmatprep.mubr.msk.bf16.mxu1 %vm720_vm3, %v1755_v41  ;;  %v1096_v41 = vadd.s32 2, %v1094_v27 }
 0x11d   : > { %v556_v32 = vpop.permute.xlu1 %555  ;;  %763 = vmatmul.mubr.bf16.vlgmr.msra.gmra.mrb[0].mxu1 %v1754_v43  ;;  %v526_v46 = vpop.permute.xlu0 %525  ;;  %vm1101_vm6 = vcmp.ge.s32.totalorder %v1095_v34, 0  ;;  %vm1107_vm7 = vcmp.lt.s32.totalorder %v1095_v34, 8 }
 0x11e   : > { %v590_v47 = vsel %vm582_vm2, %v573_v45, %v556_v32  ;;  %v1775_v48 = vcombine.low %v554_v37, %v556_v32  ;;  %1001 = vmatpush1.bf16.msra.mxu0 %v2051_v42  ;;  %v575_v52 = vsel %vm565_vm1, %v2405_v50, %v526_v46  ;;  %vm1113_vm9 = vmand %vm1101_vm6, %vm1107_vm7  ;;  %vm1102_vm10 = vcmp.ge.s32.totalorder %v1096_v41, 0 }
 0x11f   : > { %1002 = vmatprep.subr.bf16.mxu0 %v2165_v10  ;;  %v1774_v51 = vcombine.low %v588_v40, %v590_v47  ;;  %vm1108_vm11 = vcmp.lt.s32.totalorder %v1096_v41, 8  ;;  %vm1200_vm6 = vsmask.f32 4352 }
 0x120   : > { %1788 = vmatprep.mubr.msk.bf16.mxu0 %vm720_vm3, %v1775_v48  ;;  %vm1114_vm14 = vmand %vm1102_vm10, %vm1108_vm11 }
 0x121   : > { %v528_v44 = vpop.permute.xlu1 %527  ;;  %900 = vmatmul.mubr.bf16.gmra.mrb[4].mxu0 %v1774_v51  ;;  %v558_v53 = vpop.permute.xlu0 %557 }
 0x122   : > { %1003 = vmatpush1.bf16.msra.mxu0 %v2052_v49  ;;  %v592_v54 = vsel %vm582_vm2, %v575_v52, %v558_v53  ;;  %v1757_v55 = vcombine.low %v556_v32, %v558_v53  ;;  %v577_v59 = vsel %vm565_vm1, %v2413_v58, %v528_v44  ;;  %v1097_v32 = vadd.s32 3, %v1094_v27  ;;  %v2059_v52 = vld [vmem:[%s2747_s5 + $0x18] sm:$0xff]  }
 0x123   : > { %1004 = vmatprep.subr.bf16.mxu0 %v2165_v10  ;;  %v1756_v57 = vcombine.low %v590_v47, %v592_v54  ;;  %1884 = vmatprep.subr.bf16.mxu1 %v2059_v52 }
 0x124   : > { %1770 = vmatprep.mubr.msk.bf16.mxu1 %vm720_vm3, %v1757_v55  ;;  %vm1103_vm12 = vcmp.ge.s32.totalorder %v1097_v32, 0  ;;  %vm1109_vm13 = vcmp.lt.s32.totalorder %v1097_v32, 8  ;;  %1885 = vmatpush3.bf16.msra.mxu1 %v2059_v52 }
 0x125   : > { %v560_v50 = vpop.permute.xlu1 %559  ;;  %771 = vmatmul.mubr.bf16.gmra.mrb[4].mxu1 %v1756_v57  ;;  %v530_v60 = vpop.permute.xlu0 %529  ;;  %vm1115_vm5 = vmand %vm1103_vm12, %vm1109_vm13 }
 0x126   : > { %v594_v61 = vsel %vm582_vm2, %v577_v59, %v560_v50  ;;  %v1777_v62 = vcombine.low %v558_v53, %v560_v50  ;;  %1005 = vmatpush1.bf16.msra.mxu0 %v2053_v56  ;;  %v579_v1 = vsel %vm565_vm1, %v2423_v3, %v530_v60  ;;  %v2056_v3 = vld [vmem:[%s2744_s2 + $0xc0] sm:$0xff]   ;;  %v1098_v60 = vadd.s32 4, %v1094_v27  ;;  %vm2563_vm12 = vmand %vm1199_vm4, %vm1200_vm6 }
 0x127   : > { %1006 = vmatprep.subr.bf16.mxu0 %v2165_v10  ;;  %v1776_v0 = vcombine.low %v592_v54, %v594_v61 }
 0x128   : > { %1789 = vmatprep.mubr.msk.bf16.mxu0 %vm720_vm3, %v1777_v62  ;;  %vm1104_vm7 = vcmp.ge.s32.totalorder %v1098_v60, 0 }
 0x129   : > { %908 = vmatmul.mubr.bf16.gmra.mrb[8].mxu0 %v1776_v0  ;;  %v562_v58 = vpop.permute.xlu0 %561  ;;  %v532_v9 = vpop.permute.xlu1 %531 }
 0x12a   : > { %1007 = vmatpush1.bf16.msra.mxu0 %v2054_v63  ;;  %v596_v2 = vsel %vm582_vm2, %v579_v1, %v562_v58  ;;  %v1759_v4 = vcombine.low %v560_v50, %v562_v58  ;;  %1819 = vmatprep.mubr.msk.bf16.mxu0 %vm720_vm3, %v1775_v48  ;;  %v581_v14 = vsel %vm565_vm1, %v2431_v11, %v532_v9 }
 0x12b   : > { %1008 = vmatprep.subr.bf16.mxu0 %v2165_v10  ;;  %v1758_v6 = vcombine.low %v594_v61, %v596_v2 }
 0x12c   : > { %1771 = vmatprep.mubr.msk.bf16.mxu1 %vm720_vm3, %v1759_v4 }
 0x12d   : > { %779 = vmatmul.mubr.bf16.gmra.mrb[8].mxu1 %v1758_v6  ;;  %v564_v12 = vpop.permute.xlu1 %563 }
 0x12e   : > { %1009 = vmatpush1.bf16.msra.mxu0 %v2055_v5  ;;  %v1809_v13 = vcombine.low %v562_v58, %v564_v12  ;;  %v598_v15 = vsel %vm582_vm2, %v581_v14, %v564_v12  ;;  %vm1191_vm2 = vsmask.f32 256 }
 0x12f   : > { %1010 = vmatprep.subr.bf16.mxu0 %v2165_v10  ;;  %v1808_v16 = vcombine.low %v596_v2, %v598_v15  ;;  %vm2555_vm11 = vmand %vm1190_vm15, %vm1191_vm2 }
 0x132   : > { %1011 = vmatpush1.bf16.msra.mxu0 %v2056_v3 }
 0x133   : > { %1012 = vmatprep.subr.bf16.mxu0 %v2165_v10 }
 0x136   : > { %1013 = vmatpush1.bf16.msra.mxu0 %v2057_v7 }
 0x137   : > { %1014 = vmatprep.subr.bf16.mxu0 %v2165_v10 }
 0x13a   : > { %1015 = vmatpush1.bf16.msra.mxu0 %v2058_v8  ;;  %v2060_v8 = vld [vmem:[%s2747_s5 + $0x20] sm:$0xff]  }
 0x13b   : > { %1886 = vmatprep.subr.bf16.mxu1 %v2060_v8 }
 0x13c   : > { %1887 = vmatpush3.bf16.msra.mxu1 %v2060_v8 }
 0x13d   : > { %1031 = vmatmul.mubr.bf16.vlgmr.msra.gmra.mrb[0].mxu0 %v1774_v51 }
 0x13e   : > { %1820 = vmatprep.mubr.msk.bf16.mxu0 %vm720_vm3, %v1777_v62  ;;  %v1099_v62 = vadd.s32 5, %v1094_v27 }
 0x140   : > { %vm1111_vm10 = vcmp.lt.s32.totalorder %v1099_v62, 8 }
 0x145   : > { %1039 = vmatmul.mubr.bf16.gmra.mrb[4].mxu0 %v1776_v0 }
 0x146   : > { %1821 = vmatprep.mubr.msk.bf16.mxu0 %vm720_vm3, %v1809_v13 }
 0x14d   : > { %1047 = vmatmul.mubr.bf16.gmra.mrb[8].mxu0 %v1808_v16 }
 0x1f0   : > { %v764_v10 = vpop.f32.mrb[0].mxu1 }
 0x1f1   : > { %v766_v17 = vpop.f32.mrb[1].mxu1 }
 0x1f2   : > { %v767_v18 = vpop.f32.mrb[2].mxu1 }
 0x1f3   : > { %v769_v19 = vpop.f32.mrb[3].mxu1 }
 0x1f8   : > { %v772_v20 = vpop.f32.mrb[4].mxu1 }
 0x1f9   : > { %v774_v21 = vpop.f32.mrb[5].mxu1 }
 0x1fa   : > { %v775_v22 = vpop.f32.mrb[6].mxu1 }
 0x1fb   : > { %v777_v23 = vpop.f32.mrb[7].mxu1 }
 0x200   : > { %v2517_v24 = vpop.f32.mrb[8].mxu1 }
 0x201   : > { %v782_v25 = vpop.f32.mrb[9].mxu1 }
 0x202   : > { %v2519_v26 = vpop.f32.mrb[10].mxu1 }
 0x203   : > { %v785_v11 = vpop.f32.mrb[11].mxu1 }
 0x210   : > { %v1032_v29 = vpop.f32.mrb[0].mxu0 }
 0x211   : > { %v1914_v31 = vadd.f32 %v1032_v29, %v764_v10  ;;  %v1034_v33 = vpop.f32.mrb[1].mxu0 }
 0x212   : > { %v1035_v36 = vpop.f32.mrb[2].mxu0 }
 0x213   : > { %v1068_v38 = vmul.f32 %v1914_v31, %v2527_v30  ;;  %v1915_v28 = vadd.f32 %v1035_v36, %v767_v18  ;;  %v1037_v39 = vpop.f32.mrb[3].mxu0 }
 0x215   : > { %v1081_v37 = vadd.f32 %v2532_v35, %v1068_v38  ;;  %v1069_v40 = vmul.f32 %v1915_v28, %v2527_v30 }
 0x217   : > { %v1087_v42 = vmax.f32 %v1081_v37, 0.0  ;;  %v1082_v43 = vadd.f32 %v2532_v35, %v1069_v40 }
 0x218   : > { %v1040_v45 = vpop.f32.mrb[4].mxu0 }
 0x219   : > { %v1130_v46 = vsel %vm1112_vm8, %v1087_v42, 0.0  ;;  %v1088_v47 = vmax.f32 %v1082_v43, 0.0  ;;  %v1916_v48 = vadd.f32 %v1040_v45, %v772_v20  ;;  %v1042_v49 = vpop.f32.mrb[5].mxu0  ;;  %vm1110_vm8 = vcmp.lt.s32.totalorder %v1098_v60, 8 }
 0x21a   : > { %v1043_v51 = vpop.f32.mrb[6].mxu0  ;;  %v1136_v56 = vpack.c.bf16 %v1130_v46, %v1130_v46  ;;  %vm1116_vm13 = vmand %vm1104_vm7, %vm1110_vm8 }
 0x21b   : > { %v1131_v44 = vsel %vm1113_vm9, %v1088_v47, 0.0  ;;  %v1070_v53 = vmul.f32 %v1916_v48, %v2527_v30  ;;  %v1917_v54 = vadd.f32 %v1043_v51, %v775_v22  ;;  %v1045_v55 = vpop.f32.mrb[7].mxu0  ;;  %vm1105_vm9 = vcmp.ge.s32.totalorder %v1099_v62, 0 }
 0x21c   : > { %v1137_v57 = vpack.c.bf16 %v1131_v44, %v1131_v44  ;;  %v1143_v1 = vshrl.u32 %v1136_v56, 16  ;;  %v1146_v23 = vshll.u32 %v1136_v56, 16 }
 0x21d   : > { %v1083_v59 = vadd.f32 %v2532_v35, %v1070_v53  ;;  %v1071_v50 = vmul.f32 %v1917_v54, %v2527_v30  ;;  %v2061_v54 = vld [vmem:[%s2747_s5 + $0x28] sm:$0xff]  }
 0x21e   : > { %v1150_v61 = vshrl.u32 %v1137_v57, 16  ;;  %v1153_v2 = vshll.u32 %v1137_v57, 16  ;;  %v1145_v18 = vrot.slane %v1143_v1, 7  ;;  %1888 = vmatprep.subr.bf16.mxu1 %v2061_v54 }
 0x21f   : > { %v1089_v63 = vmax.f32 %v1083_v59, 0.0  ;;  %v1084_v0 = vadd.f32 %v2532_v35, %v1071_v50  ;;  %1889 = vmatpush3.bf16.msra.mxu1 %v2061_v54 }
 0x220   : > { %v1152_v58 = vrot.slane %v1150_v61, 7  ;;  %v1048_v4 = vpop.f32.mrb[8].mxu0  ;;  %v1148_v38 = vor.u32 %v1146_v23, %v1145_v18 }
 0x221   : > { %v1132_v5 = vsel %vm1114_vm14, %v1089_v63, 0.0  ;;  %v1090_v6 = vmax.f32 %v1084_v0, 0.0  ;;  %v1918_v3 = vadd.f32 %v1048_v4, %v2517_v24  ;;  %v1050_v7 = vpop.f32.mrb[9].mxu0  ;;  %vm1117_vm14 = vmand %vm1105_vm9, %vm1111_vm10 }
 0x222   : > { %v1138_v9 = vpack.c.bf16 %v1132_v5, %v1132_v5  ;;  %v1051_v12 = vpop.f32.mrb[10].mxu0  ;;  %v1155_v13 = vor.u32 %v1153_v2, %v1152_v58  ;;  %v1193_v53 = vsel %vm2555_vm11, 0, %v1148_v38 }
 0x223   : > { %v1133_v14 = vsel %vm1115_vm5, %v1090_v6, 0.0  ;;  %v1072_v15 = vmul.f32 %v1918_v3, %v2527_v30  ;;  %v1919_v16 = vadd.f32 %v1051_v12, %v2519_v26  ;;  %v1053_v10 = vpop.f32.mrb[11].mxu0  ;;  %v1202_v1 = vsel %vm2563_vm12, %v1193_v53, 0  ;;  %v2065_v53 = vld [vmem:[%s2747_s5 + $0x30] sm:$0xff]  }
 0x224   : > { %v1157_v19 = vshrl.u32 %v1138_v9, 16  ;;  %v1139_v20 = vpack.c.bf16 %v1133_v14, %v1133_v14  ;;  %v1194_v21 = vsel %vm2555_vm11, 0, %v1155_v13  ;;  %v1160_v27 = vshll.u32 %v1138_v9, 16  ;;  %v2062_v13 = vld [vmem:[%s2747_s5] sm:$0xff]  }
 0x225   : > { %v1085_v24 = vadd.f32 %v2532_v35, %v1072_v15  ;;  %v1073_v25 = vmul.f32 %v1919_v16, %v2527_v30  ;;  %v2571_v26 = vsel %vm2563_vm12, %v1194_v21, 0  ;;  %v1211_v8 = vshll.u32 %v1202_v1, 16  ;;  %1894 = vmatprep.subr.bf16.mxu1 %v2062_v13 }
 0x226   : > { %v1159_v11 = vrot.slane %v1157_v19, 7  ;;  %v1164_v29 = vshrl.u32 %v1139_v20, 16  ;;  %v1269_v31 = vrot.slane %v2571_v26, 1  ;;  %v1218_v36 = vshll.u32 %v2571_v26, 16 }
 0x227   : > { %v1091_v33 = vmax.f32 %v1085_v24, 0.0  ;;  %v1086_v34 = vadd.f32 %v2532_v35, %v1073_v25  ;;  %v1167_v30 = vshll.u32 %v1139_v20, 16  ;;  %v1216_v41 = vshrl.u32 %v2571_v26, 16 }
 0x228   : > { %v1166_v28 = vrot.slane %v1164_v29, 7  ;;  %1276 = vrot.lane.b32.xlu0 %v1269_v31, %s2164_s17  ;;  %v1162_v39 = vor.u32 %v1160_v27, %v1159_v11  ;;  %v1220_v42 = vrot.slane %v1218_v36, 1  ;;  %v1213_v18 = vrot.slane %v1211_v8, 1 }
 0x229   : > { %v1134_v37 = vsel %vm1116_vm13, %v1091_v33, 0.0  ;;  %v1092_v40 = vmax.f32 %v1086_v34, 0.0  ;;  %v1209_v17 = vshrl.u32 %v1202_v1, 16  ;;  %v1268_v11 = vrot.slane %v1202_v1, 1 }
 0x22a   : > { %v1169_v43 = vor.u32 %v1167_v30, %v1166_v28  ;;  %v1140_v45 = vpack.c.bf16 %v1134_v37, %v1134_v37  ;;  %v1195_v35 = vsel %vm2555_vm11, 0, %v1162_v39  ;;  %v1221_v46 = vor.u32 %v1220_v42, %v1216_v41 }
 0x22b   : > { %v1135_v32 = vsel %vm1117_vm14, %v1092_v40, 0.0  ;;  %v2586_v47 = vsel %vm2563_vm12, %v1195_v35, 0  ;;  %v1214_v21 = vor.u32 %v1213_v18, %v1209_v17 }
 0x22c   : > { %v1171_v48 = vshrl.u32 %v1140_v45, 16  ;;  %v1141_v49 = vpack.c.bf16 %v1135_v32, %v1135_v32  ;;  %v1270_v51 = vrot.slane %v2586_v47, 1  ;;  %1252 = vrot.lane.b32.xlu0 %v1221_v46, %s2168_s20  ;;  %v1225_v52 = vshll.u32 %v2586_v47, 16 }
 0x22d   : > { %v1196_v44 = vsel %vm2555_vm11, 0, %v1169_v43  ;;  %v1174_v56 = vshll.u32 %v1140_v45, 16  ;;  %v1223_v50 = vshrl.u32 %v2586_v47, 16 }
 0x22e   : > { %v1173_v55 = vrot.slane %v1171_v48, 7  ;;  %v1178_v57 = vshrl.u32 %v1141_v49, 16  ;;  %1278 = vrot.lane.b32.xlu1 %v1270_v51, %s2164_s17  ;;  %v1205_v59 = vsel %vm2563_vm12, %v1196_v44, 0  ;;  %v1227_v60 = vrot.slane %v1225_v52, 1  ;;  %v2064_v44 = vld [vmem:[%s2747_s5 + $0x10] sm:$0xff]  }
 0x22f   : > { %v1232_v61 = vshll.u32 %v1205_v59, 16  ;;  %v1181_v0 = vshll.u32 %v1141_v49, 16  ;;  %v1230_v2 = vshrl.u32 %v1205_v59, 16  ;;  %v1271_v10 = vrot.slane %v1205_v59, 1 }
 0x230   : > { %v1176_v62 = vor.u32 %v1174_v56, %v1173_v55  ;;  %v1180_v63 = vrot.slane %v1178_v57, 7  ;;  %v1228_v58 = vor.u32 %v1227_v60, %v1223_v50  ;;  %v2066_v55 = vld [vmem:[%s2747_s5 + $0x38] sm:$0xff]   ;;  %v2067_v56 = vld [vmem:[%s2747_s5 + $0x40] sm:$0xff]  }
 0x231   : > { %v1234_v4 = vrot.slane %v1232_v61, 1 }
 0x232   : > { %v1183_v5 = vor.u32 %v1181_v0, %v1180_v63  ;;  %v1197_v6 = vsel %vm2555_vm11, 0, %v1176_v62  ;;  %1254 = vrot.lane.b32.xlu1 %v1228_v58, %s2168_s20  ;;  %v1857_v62 = vld [vmem:[%s2748_s6] ss:$0 sm:$0xff] }
 0x233   : > { %v1235_v3 = vor.u32 %v1234_v4, %v1230_v2  ;;  %v1206_v7 = vsel %vm2563_vm12, %v1197_v6, 0  ;;  %v1858_v0 = vld [vmem:[%s2749_s7] ss:$0 sm:$0xff] }
 0x234   : > { %v1239_v9 = vshll.u32 %v1206_v7, 16  ;;  %v1198_v12 = vsel %vm2555_vm11, 0, %v1183_v5  ;;  %v1237_v15 = vshrl.u32 %v1206_v7, 16  ;;  %v1272_v24 = vrot.slane %v1206_v7, 1 }
 0x235   : > { %1256 = vrot.lane.b32.xlu0 %v1235_v3, %s2168_s20  ;;  %v2617_v14 = vsel %vm2563_vm12, %v1198_v12, 0 }
 0x236   : > { %v1241_v16 = vrot.slane %v1239_v9, 1  ;;  %v1246_v19 = vshll.u32 %v2617_v14, 16  ;;  %v1244_v22 = vshrl.u32 %v2617_v14, 16  ;;  %v1273_v27 = vrot.slane %v2617_v14, 1 }
 0x238   : > { %v1242_v20 = vor.u32 %v1241_v16, %v1237_v15  ;;  %v1248_v23 = vrot.slane %v1246_v19, 1 }
 0x239   : > { %1280 = vrot.lane.b32.xlu0 %v1271_v10, %s2164_s17 }
 0x23a   : > { %1258 = vrot.lane.b32.xlu1 %v1242_v20, %s2168_s20  ;;  %v1249_v25 = vor.u32 %v1248_v23, %v1244_v22 }
 0x23d   : > { %1250 = vrot.lane.b32.xlu0 %v1214_v21, %s2168_s20 }
 0x23e   : > { %1282 = vrot.lane.b32.xlu1 %v1272_v24, %s2164_s17 }
 0x241   : > { %1260 = vrot.lane.b32.xlu0 %v1249_v25, %s2168_s20 }
 0x242   : > { %1274 = vrot.lane.b32.xlu1 %v1268_v11, %s2164_s17 }
 0x246   : > { %1284 = vrot.lane.b32.xlu1 %v1273_v27, %s2164_s17  ;;  %s325_s17 = sand.u32 1, %s2138_s28  }
 0x247   : > { %s1715_s11 = sshll.u32 %s325_s17, 4  ;;  %s2690_s16 = scalar_lea.sflag [#allocation3], %s325_s17 }
 0x248   : > { %s327_s14 = scalar_lea.vmem [#allocation2], %s1715_s11 }
 0x249   : > { %s1618_s20 = sshll.u32 %s327_s14, 4  ;;  %s2678_s20 = int_to_ptr.vmem [resolvable:$true] %s1618_s20 }
 0x24a   : > { %s2068_s24 = scalar_lea.vmem %s2678_s20, 256  ;;  %p2075_p2 = scmp.lt.s32.totalorder %s2678_s20, %s2073_s10 }
 0x24b   : > { %p2069_p13 = scmp.ne.s32.totalorder %s2678_s20, %s2068_s24  ;;  %p2076_p4 = scmp.lt.s32.totalorder %s2074_s26, %s2068_s24 }
 0x24d   : > { %p2070_p0 = pnand %p2069_p13, %p2268_p3  ;;  %p2077_p5 = por %p2076_p4, %p2075_p2 }
 0x24f   : > { %p2071_p1 = pneg %p2070_p0 }
 0x251   : > { %p2078_p6 = pnand %p2077_p5, %p2071_p1 }
 0x29a   : > { %v1277_v29 = vpop.permute.xlu0 %1276 }
 0x29e   : > { %v1253_v33 = vpop.permute.xlu0 %1252 }
 0x29f   : > { %v1289_v34 = vsel %vm720_vm3, %v2571_v26, %v1253_v33 }
 0x2a0   : > { %v1279_v31 = vpop.permute.xlu1 %1278  ;;  %v1301_v28 = vsel %vm448_vm0, %v1289_v34, %v1277_v29 }
 0x2a4   : > { %v1255_v36 = vpop.permute.xlu1 %1254 }
 0x2a5   : > { %v1291_v38 = vsel %vm720_vm3, %v2586_v47, %v1255_v36  ;;  %v2063_v47 = vld [vmem:[%s2747_s5 + $0x8] sm:$0xff]  }
 0x2a6   : > { %v1303_v30 = vsel %vm448_vm0, %v1291_v38, %v1279_v31 }
 0x2a7   : > { %v1257_v39 = vpop.permute.xlu0 %1256  ;;  %v1831_v37 = vcombine.low %v1301_v28, %v1303_v30 }
 0x2a8   : > { %v1293_v42 = vsel %vm720_vm3, %v1205_v59, %v1257_v39 }
 0x2a9   : > { %1890 = vmatprep.mubr.msk.bf16.mxu1 %vm565_vm1, %v1831_v37 }
 0x2ab   : > { %v1281_v40 = vpop.permute.xlu0 %1280 }
 0x2ac   : > { %v1259_v41 = vpop.permute.xlu1 %1258  ;;  %v1305_v26 = vsel %vm448_vm0, %v1293_v42, %v1281_v40 }
 0x2ad   : > { %v1295_v43 = vsel %vm720_vm3, %v1206_v7, %v1259_v41  ;;  %v1839_v54 = vcombine.low %v1303_v30, %v1305_v26 }
 0x2af   : > { %v1251_v35 = vpop.permute.xlu0 %1250 }
 0x2b0   : > { %v1283_v45 = vpop.permute.xlu1 %1282  ;;  %v1287_v48 = vsel %vm720_vm3, %v1202_v1, %v1251_v35 }
 0x2b1   : > { %v1307_v32 = vsel %vm448_vm0, %v1295_v43, %v1283_v45 }
 0x2b2   : > { %v1832_v46 = vcombine.low %v1305_v26, %v1307_v32 }
 0x2b3   : > { %v1261_v57 = vpop.permute.xlu0 %1260 }
 0x2b4   : > { %v1275_v49 = vpop.permute.xlu1 %1274  ;;  %1891 = vmatmul.mubr.msk.bf16.vlgmr.msra.gmra.mrb[12].mxu1 %vm565_vm1, %v1832_v46  ;;  %v1297_v50 = vsel %vm720_vm3, %v2617_v14, %v1261_v57 }
 0x2b5   : > { %v1299_v51 = vsel %vm448_vm0, %v1287_v48, %v1275_v49  ;;  %1895 = vmatpush3.bf16.msra.mxu1 %v2062_v13 }
 0x2b6   : > { %v1838_v52 = vcombine.low %v1299_v51, %v1301_v28  ;;  %1896 = vmatprep.subr.bf16.mxu1 %v2063_v47 }
 0x2b8   : > { %1900 = vmatprep.mubr.msk.bf16.mxu1 %vm565_vm1, %v1838_v52  ;;  %v1285_v59 = vpop.permute.xlu1 %1284 }
 0x2b9   : > { %1897 = vmatpush3.bf16.msra.mxu1 %v2063_v47  ;;  %v1309_v60 = vsel %vm448_vm0, %v1297_v50, %v1285_v59  ;;  %vm1597_vm0 = vcmask 125952  }
 0x2ba   : > { %1898 = vmatprep.subr.bf16.mxu1 %v2064_v44  ;;  %v1851_v61 = vcombine.low %v1307_v32, %v1309_v60 }
 0x2bd   : > { %1899 = vmatpush3.bf16.msra.mxu1 %v2064_v44 }
 0x2be   : > { %1904 = vmatprep.subr.bf16.mxu1 %v2065_v53 }
 0x2c0   : > { %1901 = vmatmul.mubr.msk.bf16.vlgmr.msra.gmra.mrb[12].mxu1 %vm565_vm1, %v1839_v54 }
 0x2c1   : > { %1905 = vmatpush3.bf16.msra.mxu1 %v2065_v53  ;;  %1910 = vmatprep.mubr.msk.bf16.mxu1 %vm565_vm1, %v1839_v54 }
 0x2c2   : > { %1906 = vmatprep.subr.bf16.mxu1 %v2066_v55 }
 0x2c5   : > { %1907 = vmatpush3.bf16.msra.mxu1 %v2066_v55 }
 0x2c6   : > { %1908 = vmatprep.subr.bf16.mxu1 %v2067_v56 }
 0x2c9   : > { %1909 = vmatpush3.bf16.msra.mxu1 %v2067_v56 }
 0x2cc   : > { %1911 = vmatmul.mubr.msk.bf16.vlgmr.msra.gmra.mrb[12].mxu1 %vm565_vm1, %v1851_v61 }
 0x39f   : > { %v1912_v63 = vpop.f32.mrb[12].mxu1 }
 0x3a0   : > { %v1576_v1 = vmul.f32 %v1912_v63, %v1857_v62  ;;  %v1548_v58 = vpop.f32.mrb[13].mxu1 }
 0x3a1   : > { %v1574_v2 = vmul.f32 %v1857_v62, %v1548_v58  ;;  %v1913_v4 = vpop.f32.mrb[14].mxu1 }
 0x3a2   : > { %v1587_v5 = vadd.f32 %v1858_v0, %v1576_v1  ;;  %v1577_v6 = vmul.f32 %v1913_v4, %v1857_v62  ;;  %v1551_v3 = vpop.f32.mrb[15].mxu1 }
 0x3a3   : > { %v1585_v7 = vadd.f32 %v1858_v0, %v1574_v2  ;;  %v1575_v8 = vmul.f32 %v1857_v62, %v1551_v3 }
 0x3a4   : > { %v1591_v9 = vmax.f32 %v1587_v5, 0.0  ;;  %v1588_v12 = vadd.f32 %v1858_v0, %v1577_v6 }
 0x3a5   : > { %v1589_v13 = vmax.f32 %v1585_v7, 0.0  ;;  %v1586_v14 = vadd.f32 %v1858_v0, %v1575_v8 }
 0x3a6   : > { %v1595_v15 = vpack.c.bf16 %v1591_v9, %v1591_v9  ;;  %v1592_v16 = vmax.f32 %v1588_v12, 0.0 }
 0x3a7   : > { %v1593_v10 = vpack.c.bf16 %v1589_v13, %v1589_v13  ;;  %v1590_v18 = vmax.f32 %v1586_v14, 0.0 }
 0x3a8   : > { %1600 = vst.msk [vmem:[%s327_s14 + $0x8] sm:$0xf] %vm1597_vm0, %v1595_v15  ;;  %v1596_v19 = vpack.c.bf16 %v1592_v16, %v1592_v16 }
 0x3a9   : > { %1598 = vst.msk [vmem:[%s327_s14] sm:$0xf] %vm1597_vm0, %v1593_v10  ;;  %v1594_v20 = vpack.c.bf16 %v1590_v18, %v1590_v18 }
 0x3aa   : > { %1601 = vst.msk [vmem:[%s327_s14 + $0xc] sm:$0xf] %vm1597_vm0, %v1596_v19 }
 0x3ab   : > { %1599 = vst.msk [vmem:[%s327_s14 + $0x4] sm:$0xf] %vm1597_vm0, %v1594_v20 }
 0x3ac   : > { %2081 = shalt.err (!%p2078_p6)
}
 0x3ad   : > { %s2082_s17 = scalar_lea.hbm %s2684_s21, 256  ;;  %s2086_s13 = scalar_lea.hbm %s2750_s8, 1024 }
 0x3ae   : > { %p2083_p7 = scmp.ne.s32.totalorder %s2684_s21, %s2082_s17  ;;  %p2087_p11 = scmp.lt.u32.totalorder %s2684_s21, %s2750_s8 }
 0x3af   : > { %p2088_p12 = scmp.lt.u32.totalorder %s2086_s13, %s2082_s17  ;;  %p2090_p0 = scmp.lt.u32.totalorder %s2082_s17, %s2684_s21 }
 0x3b0   : > { %p2084_p9 = pnand %p2083_p7, %p2268_p3 }
 0x3b1   : > { %p2089_p13 = por %p2088_p12, %p2087_p11 }
 0x3b2   : > { %p2085_p10 = pneg %p2084_p9 }
 0x3b3   : > { %p2091_p1 = por %p2090_p0, %p2089_p13 }
 0x3b5   : > { %p2092_p2 = pnand %p2091_p1, %p2085_p10 }
 0x3b7   : > { %2095 = shalt.err (!%p2092_p2)
}
 0x3b8   : > { %s2170_s30 = smov 64   ;;  %s2171_s22 = smov 4  }
 0x3b9   : > { %1942 = dma.vmem_to_hbm [thread:$0]  (%p2268_p3), %s2678_s20, 256, %s2684_s21, %s2690_s16, %s2170_s30, %s2170_s30, %s2171_s22  }
 0x3ba PF: > { %p1948_p4 = scmp.ge.s32.totalorder %s2162_s12, 2  ;;  %s1633_s24 = sand.u32 1, %s2134_s27  }
 0x3bb   : > { %s1634_s25 = scalar_lea.sflag [#allocation3], %s1633_s24 }
 0x3bc   : > { %p1945_p5 = pnand %p1948_p4, %p2277_p8 }
 0x3be   : > { %2129 = dma.done.wait (!%p1945_p5), %s1634_s25, 256  }
 0x3bf   : > { %2131 = vsyncadd (!%p1945_p5), %s1634_s25, 4294967040  ;;  %s21_s12 = sadd.s32 1, %s2162_s12   ;;  %s2765_s30 = sld [smem:[#allocation5_spill]] }
 0x3c0   : > { %p18_p6 = scmp.ge.s32.totalorder %s21_s12, 6   ;;  %s2766_s9 = sld [smem:[#allocation6_spill]] }
 0x3c1   : > { %s2767_s10 = sld [smem:[#allocation7_spill]]  ;;  %s2768_s11 = sld [smem:[#allocation8_spill]] }
 0x3c2   : > { %s2769_s27 = smov %s2138_s28  ;;  %s2770_s28 = smov %s2142_s29 }
 0x3c3   : > { %s2771_s29 = smov %s2286_s23  ;;  %20 = sbr.rel (!%p18_p6) target bundleno = 5 (0x5), region = 96 }
 0x3ca   :  { %1639 = vsyncpa [#allocation3], 1 }
 0x3cb   :  { %1641 = vsyncpa [#allocation3 + $0x1], 1 }

</bundles_post_ra>
